<compile_context>
chip_gen: v7x
topology: tpu7x:2x2x1
jax: 0.10.0
libtpu: 0.0.40
codegen_flags: <defaults>
</compile_context>

<pallas_src>
import jax
import jax.numpy as jnp
from jax.experimental import pallas as pl
from jax.experimental.pallas import tpu as pltpu


def _proj_norm_kernel(pooled_ref, w1_ref, b1_ref, w2_ref, b2_ref, out_ref):
    """One grid step = one TILE_B-row batch tile.

    pooled_ref : VMEM [TILE_B, D_in]    f32 pooled token per batch row
    w1_ref     : VMEM [D_in, H]         bf16 (constant across grid -> resident)
    b1_ref     : VMEM [1, H]            f32
    w2_ref     : VMEM [H, D_out_p]      bf16 (constant across grid -> resident)
    b2_ref     : VMEM [1, D_out_p]      f32
    out_ref    : VMEM [TILE_B, D_out_p] f32, lane-dense (D_out_p % 128 == 0)
    """
    # bf16 operands on the MXU, f32 accumulation.
    x = pooled_ref[...].astype(w1_ref.dtype)
    z = jnp.dot(x, w1_ref[...], preferred_element_type=jnp.float32) + b1_ref[...]

    # Exact-erf GELU in f32 (nn.GELU default).  Dropout(p=0.5) -> eval identity.
    a = 0.5 * z * (1.0 + jax.lax.erf(z * 0.7071067811865476))

    y = jnp.dot(a.astype(w2_ref.dtype), w2_ref[...],
                preferred_element_type=jnp.float32) + b2_ref[...]

    # F.normalize(dim=-1): y / max(||y||, 1e-12) == y * rsqrt(max(||y||^2, 1e-24)).
    # Padded output columns are exactly zero, so they do not perturb the norm.
    nrm_sq = jnp.sum(y * y, axis=-1, keepdims=True)
    inv = jax.lax.rsqrt(jnp.maximum(nrm_sq, 1e-24))
    out_ref[...] = (y * inv).astype(out_ref.dtype)


def text_encoder_head(pooled, w1_t, b1, w2_t, b2, *, tile_b_max=256):
    """pooled: [B, D_in] f32 (already token-pooled); weights pre-transposed to [in, out].

    tile_b_max=256 keeps the f32 pooled/out tiles + bf16 weights inside v7x's
    32 MiB scoped-VMEM default; on v5e/v6e (128 MiB VMEM) it can be raised to
    512 for large B.
    """
    B, D_in = pooled.shape
    H = w1_t.shape[1]
    D_out = w2_t.shape[1]

    # --- lane-dense output: pad D_out up to a multiple of 128 with zero cols.
    D_out_p = pl.cdiv(D_out, 128) * 128
    if D_out_p != D_out:
        w2_t = jnp.pad(w2_t, ((0, 0), (0, D_out_p - D_out)))
        b2 = jnp.pad(b2, ((0, 0), (0, D_out_p - D_out)))

    # --- bf16 weights (halve HBM traffic / VMEM residency, native MXU rate).
    #     In production, store params as bf16 to avoid the per-call cast.
    w1_bf = w1_t.astype(jnp.bfloat16)
    w2_bf = w2_t.astype(jnp.bfloat16)
    b1_f = b1.astype(jnp.float32)
    b2_f = b2.astype(jnp.float32)

    # --- batch tiling: pad at most to the next multiple of 8; even step count
    #     when tiled so v7x's second TensorCore gets half the batch.
    if B <= tile_b_max:
        tile_b, num_steps, b_pad = B, 1, B
    else:
        num_steps = pl.cdiv(B, tile_b_max)
        if num_steps % 2:
            num_steps += 1
        tile_b = ((pl.cdiv(B, num_steps) + 7) // 8) * 8
        b_pad = num_steps * tile_b
    if b_pad != B:
        pooled = jnp.pad(pooled, ((0, b_pad - B), (0, 0)))

    def _call(single_buffer_weights):
        if single_buffer_weights:
            def const_spec(shape):
                return pl.BlockSpec(shape, lambda i: (0, 0),
                                    pipeline_mode=pl.Buffered(1))
        else:
            def const_spec(shape):
                return pl.BlockSpec(shape, lambda i: (0, 0))

        # Explicit scoped-VMEM budget from the actual tile / weight sizes.
        wb_bufs = 1 if single_buffer_weights else 2
        need = (
            ((D_in * H + H * D_out_p) * 2 + (H + D_out_p) * 4) * wb_bufs  # weights+biases
            + tile_b * D_in * 4 * 2          # double-buffered pooled tile
            + tile_b * D_out_p * 4 * 2       # double-buffered out tile
            + tile_b * (D_in + H + D_out_p) * 4 * 2  # activation / spill slack
        )
        vmem_limit = min(max(int(need * 1.5) + (2 << 20), 16 << 20), 64 << 20)

        return pl.pallas_call(
            _proj_norm_kernel,
            out_shape=jax.ShapeDtypeStruct((b_pad, D_out_p), jnp.float32),
            grid=(num_steps,),
            in_specs=[
                pl.BlockSpec((tile_b, D_in), lambda i: (i, 0)),
                const_spec((D_in, H)),
                const_spec((1, H)),
                const_spec((H, D_out_p)),
                const_spec((1, D_out_p)),
            ],
            out_specs=pl.BlockSpec((tile_b, D_out_p), lambda i: (i, 0)),
            compiler_params=pltpu.CompilerParams(
                dimension_semantics=("parallel",),
                vmem_limit_bytes=vmem_limit,
            ),
        )(pooled, w1_bf, b1_f, w2_bf, b2_f)

    try:
        out = _call(True)
    except Exception:
        # TODO(synk): pipeline_mode=pl.Buffered(1) rejected on this jax build;
        #             fall back to default double-buffered weight specs.
        out = _call(False)

    return out[:B, :D_out]


def text_encoder_forward(name, hidden, input_ids, pad_token_id, params):
    """Mirrors TextEncoder.forward downstream of the HF base model."""
    B, L, _ = hidden.shape
    if "GPT2" in name.upper():
        counts = jnp.sum((input_ids != pad_token_id).astype(jnp.int32), axis=-1)
        # counts-1 can be -1 for an all-padding row; PyTorch's -1 picks the last
        # token, so map via mod L (also keeps the gather index in range).
        seq_idx = jnp.mod(counts - 1, L).astype(jnp.int32)
    else:  # ROBERTA: CLS token (position 0)
        seq_idx = jnp.zeros((B,), dtype=jnp.int32)

    # Token pooling: gather one row per batch element in the wrapper so the
    # Pallas kernel sees a dense [B, D_in] tile (no L x DMA, real MXU M-dim).
    pooled = hidden[jnp.arange(B), seq_idx]  # (B, D_in)

    return text_encoder_head(
        pooled, params["w1_t"], params["b1"], params["w2_t"], params["b2"]
    )


def _reference(hidden, seq_idx, w1_t, b1, w2_t, b2):
    """Pure-JAX f32 reference of the PyTorch head semantics."""
    B = hidden.shape[0]
    pooled = hidden[jnp.arange(B), seq_idx]                      # (B, D_in)
    z = pooled @ w1_t + b1
    a = 0.5 * z * (1.0 + jax.lax.erf(z * 0.7071067811865476))
    y = a @ w2_t + b2
    n = jnp.sqrt(jnp.sum(y * y, axis=-1, keepdims=True))
    return y / jnp.maximum(n, 1e-12)


if __name__ == "__main__":
    # Small config consistent with the module:
    #   text_cfg = {'name': 'gpt2', 'max_len': 8, 'out_size': 32}
    #   proj_cfg = {'hidden_size': 64, 'out_size': 32}
    B, L, D_IN, H, D_OUT = 2, 8, 32, 64, 32
    PAD_ID = 0

    key = jax.random.PRNGKey(0)
    k_hid, k_w1, k_b1, k_w2, k_b2, k_ids = jax.random.split(key, 6)

    # Synthetic base-model output (last hidden state) and token ids.
    hidden = jax.random.normal(k_hid, (B, L, D_IN), dtype=jnp.float32)
    lengths = jnp.array([5, 7], dtype=jnp.int32)  # non-pad token counts per row
    pos = jnp.arange(L)[None, :]
    input_ids = jnp.where(
        pos < lengths[:, None],
        jax.random.randint(k_ids, (B, L), 1, 100),
        PAD_ID,
    ).astype(jnp.int32)

    # Projection parameters (PyTorch Linear stores [out, in]; transpose to the
    # kernel's [in, out] layout).
    w1 = jax.random.normal(k_w1, (H, D_IN), dtype=jnp.float32) * 0.05
    b1 = jax.random.normal(k_b1, (1, H), dtype=jnp.float32) * 0.05
    w2 = jax.random.normal(k_w2, (D_OUT, H), dtype=jnp.float32) * 0.05
    b2 = jax.random.normal(k_b2, (1, D_OUT), dtype=jnp.float32) * 0.05
    params = {"w1_t": w1.T, "b1": b1, "w2_t": w2.T, "b2": b2}

    out = text_encoder_forward("GPT2", hidden, input_ids, PAD_ID, params)
    out = jax.block_until_ready(out)

    # Sanity check against a pure-JAX f32 reference.  bf16 matmul operands
    # (per perf review) -> loosened tolerance vs the previous all-f32 kernel.
    counts = jnp.sum((input_ids != PAD_ID).astype(jnp.int32), -1)
    seq_idx = jnp.mod(counts - 1, L).astype(jnp.int32)
    ref = _reference(hidden, seq_idx, params["w1_t"], params["b1"],
                     params["w2_t"], params["b2"])
    assert out.shape == (B, D_OUT)
    assert bool(jnp.all(jnp.isfinite(out))), "non-finite output"
    assert jnp.allclose(out, ref, atol=2e-2, rtol=2e-2), "mismatch vs reference"

    print("KERNEL_OK")
</pallas_src>

<mosaic_0001>
module attributes {stable_mosaic.version = 11 : i64} {
  func.func @_proj_norm_kernel(%arg0: i32, %arg1: memref<2x32xf32, #tpu.memory_space<vmem>>, %arg2: memref<32x64xbf16, #tpu.memory_space<vmem>>, %arg3: memref<1x64xf32, #tpu.memory_space<vmem>>, %arg4: memref<64x128xbf16, #tpu.memory_space<vmem>>, %arg5: memref<1x128xf32, #tpu.memory_space<vmem>>, %arg6: memref<2x128xf32, #tpu.memory_space<vmem>>) attributes {dimension_semantics = [#tpu.dimension_semantics<parallel>], iteration_bounds = array<i64: 1>, scalar_prefetch = 0 : i64, scratch_operands = 0 : i64, tpu.core_type = #tpu.core_type<tc>, window_params = [{transform_indices = @transform_0, window_bounds = array<i64: 2, 32>}, {pipeline_mode = #tpu.pipeline_mode<synchronous>, transform_indices = @transform_1, window_bounds = array<i64: 32, 64>}, {pipeline_mode = #tpu.pipeline_mode<synchronous>, transform_indices = @transform_2, window_bounds = array<i64: 1, 64>}, {pipeline_mode = #tpu.pipeline_mode<synchronous>, transform_indices = @transform_3, window_bounds = array<i64: 64, 128>}, {pipeline_mode = #tpu.pipeline_mode<synchronous>, transform_indices = @transform_4, window_bounds = array<i64: 1, 128>}, {transform_indices = @transform_5, window_bounds = array<i64: 2, 128>}]} {
    %c0 = arith.constant 0 : index
    %c0_0 = arith.constant 0 : index
    %0 = vector.load %arg1[%c0, %c0_0] : memref<2x32xf32, #tpu.memory_space<vmem>>, vector<2x32xf32>
    %1 = arith.truncf %0 : vector<2x32xf32> to vector<2x32xbf16>
    %c0_1 = arith.constant 0 : index
    %c0_2 = arith.constant 0 : index
    %2 = vector.load %arg2[%c0_1, %c0_2] : memref<32x64xbf16, #tpu.memory_space<vmem>>, vector<32x64xbf16>
    %cst = arith.constant dense<0.000000e+00> : vector<2x64xf32>
    %3 = tpu.matmul %1, %2, %cst {dimension_numbers = #tpu.dot_dimension_numbers<[1], [0], [0], [1], [0, 0, 1, 1], [], []>} : vector<2x32xbf16>, vector<32x64xbf16>, vector<2x64xf32> -> vector<2x64xf32>
    %c0_3 = arith.constant 0 : index
    %c0_4 = arith.constant 0 : index
    %4 = vector.load %arg3[%c0_3, %c0_4] : memref<1x64xf32, #tpu.memory_space<vmem>>, vector<1x64xf32>
    %5 = vector.broadcast %4 : vector<1x64xf32> to vector<2x64xf32>
    %6 = arith.addf %3, %5 : vector<2x64xf32>
    %cst_5 = arith.constant 5.000000e-01 : f32
    %7 = vector.broadcast %cst_5 : f32 to vector<2x64xf32>
    %8 = arith.mulf %7, %6 : vector<2x64xf32>
    %cst_6 = arith.constant 0.707106769 : f32
    %9 = vector.broadcast %cst_6 : f32 to vector<2x64xf32>
    %10 = arith.mulf %6, %9 : vector<2x64xf32>
    %11 = math.erf %10 : vector<2x64xf32>
    %cst_7 = arith.constant 1.000000e+00 : f32
    %12 = vector.broadcast %cst_7 : f32 to vector<2x64xf32>
    %13 = arith.addf %12, %11 : vector<2x64xf32>
    %14 = arith.mulf %8, %13 : vector<2x64xf32>
    %15 = arith.truncf %14 : vector<2x64xf32> to vector<2x64xbf16>
    %c0_8 = arith.constant 0 : index
    %c0_9 = arith.constant 0 : index
    %16 = vector.load %arg4[%c0_8, %c0_9] : memref<64x128xbf16, #tpu.memory_space<vmem>>, vector<64x128xbf16>
    %cst_10 = arith.constant dense<0.000000e+00> : vector<2x128xf32>
    %17 = tpu.matmul %15, %16, %cst_10 {dimension_numbers = #tpu.dot_dimension_numbers<[1], [0], [0], [1], [0, 0, 1, 1], [], []>} : vector<2x64xbf16>, vector<64x128xbf16>, vector<2x128xf32> -> vector<2x128xf32>
    %c0_11 = arith.constant 0 : index
    %c0_12 = arith.constant 0 : index
    %18 = vector.load %arg5[%c0_11, %c0_12] : memref<1x128xf32, #tpu.memory_space<vmem>>, vector<1x128xf32>
    %19 = vector.broadcast %18 : vector<1x128xf32> to vector<2x128xf32>
    %20 = arith.addf %17, %19 : vector<2x128xf32>
    %21 = arith.mulf %20, %20 : vector<2x128xf32>
    %cst_13 = arith.constant dense<0.000000e+00> : vector<2xf32>
    %22 = vector.multi_reduction <add>, %21, %cst_13 [1] : vector<2x128xf32> to vector<2xf32>
    %23 = vector.shape_cast %22 : vector<2xf32> to vector<2x1xf32>
    %cst_14 = arith.constant 1.000000e-24 : f32
    %24 = vector.broadcast %cst_14 : f32 to vector<2x1xf32>
    %25 = arith.maximumf %23, %24 : vector<2x1xf32>
    %26 = math.rsqrt %25 : vector<2x1xf32>
    %27 = vector.broadcast %26 : vector<2x1xf32> to vector<2x128xf32>
    %28 = arith.mulf %20, %27 : vector<2x128xf32>
    %c0_15 = arith.constant 0 : index
    %c0_16 = arith.constant 0 : index
    %29 = vector.load %arg6[%c0_15, %c0_16] : memref<2x128xf32, #tpu.memory_space<vmem>>, vector<2x128xf32>
    tpu.vector_store %arg6[%c0_15, %c0_16], %28 {strides = array<i32>} : memref<2x128xf32, #tpu.memory_space<vmem>>, vector<2x128xf32>,
    return
  }
  func.func @transform_0(%arg0: i32) -> (i32, i32) {
    %c0_i32 = arith.constant 0 : i32
    %c0_i32_0 = arith.constant 0 : i32
    return %arg0, %c0_i32 : i32, i32
  }
  func.func @transform_1(%arg0: i32) -> (i32, i32) {
    %c0_i32 = arith.constant 0 : i32
    %c0_i32_0 = arith.constant 0 : i32
    %c0_i32_1 = arith.constant 0 : i32
    return %c0_i32, %c0_i32_0 : i32, i32
  }
  func.func @transform_2(%arg0: i32) -> (i32, i32) {
    %c0_i32 = arith.constant 0 : i32
    %c0_i32_0 = arith.constant 0 : i32
    %c0_i32_1 = arith.constant 0 : i32
    return %c0_i32, %c0_i32_0 : i32, i32
  }
  func.func @transform_3(%arg0: i32) -> (i32, i32) {
    %c0_i32 = arith.constant 0 : i32
    %c0_i32_0 = arith.constant 0 : i32
    %c0_i32_1 = arith.constant 0 : i32
    return %c0_i32, %c0_i32_0 : i32, i32
  }
  func.func @transform_4(%arg0: i32) -> (i32, i32) {
    %c0_i32 = arith.constant 0 : i32
    %c0_i32_0 = arith.constant 0 : i32
    %c0_i32_1 = arith.constant 0 : i32
    return %c0_i32, %c0_i32_0 : i32, i32
  }
  func.func @transform_5(%arg0: i32) -> (i32, i32) {
    %c0_i32 = arith.constant 0 : i32
    %c0_i32_0 = arith.constant 0 : i32
    return %arg0, %c0_i32 : i32, i32
  }
}

module attributes {stable_mosaic.version = 11 : i64} {
  func.func @_proj_norm_kernel(%arg0: i32, %arg1: memref<2x32xf32, #tpu.memory_space<vmem>>, %arg2: memref<32x64xbf16, #tpu.memory_space<vmem>>, %arg3: memref<1x64xf32, #tpu.memory_space<vmem>>, %arg4: memref<64x128xbf16, #tpu.memory_space<vmem>>, %arg5: memref<1x128xf32, #tpu.memory_space<vmem>>, %arg6: memref<2x128xf32, #tpu.memory_space<vmem>>) attributes {dimension_semantics = [#tpu.dimension_semantics<parallel>], iteration_bounds = array<i64: 1>, scalar_prefetch = 0 : i64, scratch_operands = 0 : i64, tpu.core_type = #tpu.core_type<tc>, window_params = [{transform_indices = @transform_0, window_bounds = array<i64: 2, 32>}, {pipeline_mode = #tpu.pipeline_mode<synchronous>, transform_indices = @transform_1, window_bounds = array<i64: 32, 64>}, {pipeline_mode = #tpu.pipeline_mode<synchronous>, transform_indices = @transform_2, window_bounds = array<i64: 1, 64>}, {pipeline_mode = #tpu.pipeline_mode<synchronous>, transform_indices = @transform_3, window_bounds = array<i64: 64, 128>}, {pipeline_mode = #tpu.pipeline_mode<synchronous>, transform_indices = @transform_4, window_bounds = array<i64: 1, 128>}, {transform_indices = @transform_5, window_bounds = array<i64: 2, 128>}]} {
    %c0 = arith.constant 0 : index
    %c0_0 = arith.constant 0 : index
    %0 = vector.load %arg1[%c0, %c0_0] : memref<2x32xf32, #tpu.memory_space<vmem>>, vector<2x32xf32>
    %1 = arith.truncf %0 : vector<2x32xf32> to vector<2x32xbf16>
    %c0_1 = arith.constant 0 : index
    %c0_2 = arith.constant 0 : index
    %2 = vector.load %arg2[%c0_1, %c0_2] : memref<32x64xbf16, #tpu.memory_space<vmem>>, vector<32x64xbf16>
    %cst = arith.constant dense<0.000000e+00> : vector<2x64xf32>
    %3 = tpu.matmul %1, %2, %cst {dimension_numbers = #tpu.dot_dimension_numbers<[1], [0], [0], [1], [0, 0, 1, 1], [], []>} : vector<2x32xbf16>, vector<32x64xbf16>, vector<2x64xf32> -> vector<2x64xf32>
    %c0_3 = arith.constant 0 : index
    %c0_4 = arith.constant 0 : index
    %4 = vector.load %arg3[%c0_3, %c0_4] : memref<1x64xf32, #tpu.memory_space<vmem>>, vector<1x64xf32>
    %5 = vector.broadcast %4 : vector<1x64xf32> to vector<2x64xf32>
    %6 = arith.addf %3, %5 : vector<2x64xf32>
    %cst_5 = arith.constant 5.000000e-01 : f32
    %7 = vector.broadcast %cst_5 : f32 to vector<2x64xf32>
    %8 = arith.mulf %7, %6 : vector<2x64xf32>
    %cst_6 = arith.constant 0.707106769 : f32
    %9 = vector.broadcast %cst_6 : f32 to vector<2x64xf32>
    %10 = arith.mulf %6, %9 : vector<2x64xf32>
    %11 = math.erf %10 : vector<2x64xf32>
    %cst_7 = arith.constant 1.000000e+00 : f32
    %12 = vector.broadcast %cst_7 : f32 to vector<2x64xf32>
    %13 = arith.addf %12, %11 : vector<2x64xf32>
    %14 = arith.mulf %8, %13 : vector<2x64xf32>
    %15 = arith.truncf %14 : vector<2x64xf32> to vector<2x64xbf16>
    %c0_8 = arith.constant 0 : index
    %c0_9 = arith.constant 0 : index
    %16 = vector.load %arg4[%c0_8, %c0_9] : memref<64x128xbf16, #tpu.memory_space<vmem>>, vector<64x128xbf16>
    %cst_10 = arith.constant dense<0.000000e+00> : vector<2x128xf32>
    %17 = tpu.matmul %15, %16, %cst_10 {dimension_numbers = #tpu.dot_dimension_numbers<[1], [0], [0], [1], [0, 0, 1, 1], [], []>} : vector<2x64xbf16>, vector<64x128xbf16>, vector<2x128xf32> -> vector<2x128xf32>
    %c0_11 = arith.constant 0 : index
    %c0_12 = arith.constant 0 : index
    %18 = vector.load %arg5[%c0_11, %c0_12] : memref<1x128xf32, #tpu.memory_space<vmem>>, vector<1x128xf32>
    %19 = vector.broadcast %18 : vector<1x128xf32> to vector<2x128xf32>
    %20 = arith.addf %17, %19 : vector<2x128xf32>
    %21 = arith.mulf %20, %20 : vector<2x128xf32>
    %cst_13 = arith.constant dense<0.000000e+00> : vector<2xf32>
    %22 = vector.multi_reduction <add>, %21, %cst_13 [1] : vector<2x128xf32> to vector<2xf32>
    %23 = vector.shape_cast %22 : vector<2xf32> to vector<2x1xf32>
    %cst_14 = arith.constant 1.000000e-24 : f32
    %24 = vector.broadcast %cst_14 : f32 to vector<2x1xf32>
    %25 = arith.maximumf %23, %24 : vector<2x1xf32>
    %26 = math.rsqrt %25 : vector<2x1xf32>
    %27 = vector.broadcast %26 : vector<2x1xf32> to vector<2x128xf32>
    %28 = arith.mulf %20, %27 : vector<2x128xf32>
    %c0_15 = arith.constant 0 : index
    %c0_16 = arith.constant 0 : index
    %29 = vector.load %arg6[%c0_15, %c0_16] : memref<2x128xf32, #tpu.memory_space<vmem>>, vector<2x128xf32>
    tpu.vector_store %arg6[%c0_15, %c0_16], %28 {strides = array<i32>} : memref<2x128xf32, #tpu.memory_space<vmem>>, vector<2x128xf32>,
    return
  }
  func.func @transform_0(%arg0: i32) -> (i32, i32) {
    %c0_i32 = arith.constant 0 : i32
    %c0_i32_0 = arith.constant 0 : i32
    return %arg0, %c0_i32 : i32, i32
  }
  func.func @transform_1(%arg0: i32) -> (i32, i32) {
    %c0_i32 = arith.constant 0 : i32
    %c0_i32_0 = arith.constant 0 : i32
    %c0_i32_1 = arith.constant 0 : i32
    return %c0_i32, %c0_i32_0 : i32, i32
  }
  func.func @transform_2(%arg0: i32) -> (i32, i32) {
    %c0_i32 = arith.constant 0 : i32
    %c0_i32_0 = arith.constant 0 : i32
    %c0_i32_1 = arith.constant 0 : i32
    return %c0_i32, %c0_i32_0 : i32, i32
  }
  func.func @transform_3(%arg0: i32) -> (i32, i32) {
    %c0_i32 = arith.constant 0 : i32
    %c0_i32_0 = arith.constant 0 : i32
    %c0_i32_1 = arith.constant 0 : i32
    return %c0_i32, %c0_i32_0 : i32, i32
  }
  func.func @transform_4(%arg0: i32) -> (i32, i32) {
    %c0_i32 = arith.constant 0 : i32
    %c0_i32_0 = arith.constant 0 : i32
    %c0_i32_1 = arith.constant 0 : i32
    return %c0_i32, %c0_i32_0 : i32, i32
  }
  func.func @transform_5(%arg0: i32) -> (i32, i32) {
    %c0_i32 = arith.constant 0 : i32
    %c0_i32_0 = arith.constant 0 : i32
    return %arg0, %c0_i32 : i32, i32
  }
}

</mosaic_0001>

<bundles_post_ra>
// kernel: tpu_custom_call.1
= control target key start
LH: loop header
LB: loop body
LE: loop exit
PB: predicated region body
PF: predicated region fallthrough
CT: control target
= control target key end

     0   :  { %10 = vsyncpa [#allocation3], 0  ;;  %s492_s0 = inlined_call_operand.hbm [shape: f32[2,32], index: 0, kind: input, shape index: {}]   ;;  %s493_s1 = inlined_call_operand.hbm [shape: bf16[32,64], index: 1, kind: input, shape index: {}]   ;;  %s494_s2 = inlined_call_operand.vmem [shape: f32[1,64], index: 2, kind: input, shape index: {}]   ;;  %s495_s3 = inlined_call_operand.hbm [shape: bf16[64,128], index: 3, kind: input, shape index: {}]   ;;  %s496_s4 = inlined_call_operand.vmem [shape: f32[1,128], index: 4, kind: input, shape index: {}]   ;;  %s497_s5 = inlined_call_operand.hbm [shape: f32[2,128], index: 5, kind: output, shape index: {}]  }
   0x1   :  { %11 = vsyncpa [#allocation6], 0 }
   0x2   :  { %12 = vsyncpa [#allocation4], 0  ;;  %s394_s18 = smov [#allocation5]   ;;  %s300_s22 = scalar_lea.hbm %s493_s1, 256 }
   0x3   :  { %s28_s19 = sshll.u32 %s394_s18, 4  ;;  %p301_p0 = scmp.ne.s32.totalorder %s493_s1, %s300_s22  ;;  %s29_s19 = int_to_ptr.vmem [resolvable:$true] %s28_s19 }
   0x4   :  { %p304_p1 = scmp.lt.u32.totalorder %s300_s22, %s493_s1 }
   0x6   :  { %p306_p2 = pnand %p304_p1, %p301_p0 }
   0x8   :  { %309 = shalt.err (!%p306_p2)
}
   0x9   :  { %s310_s27 = scalar_lea.vmem %s29_s19, 256  ;;  %p315_p4 = scmp.lt.s32.totalorder %s29_s19, %s29_s19 }
   0xa   :  { %p311_p3 = scmp.ne.s32.totalorder %s29_s19, %s310_s27  ;;  %p316_p5 = scmp.lt.s32.totalorder %s310_s27, %s310_s27 }
   0xc   :  { %p317_p6 = por %p316_p5, %p315_p4 }
   0xe   :  { %p318_p7 = pnand %p317_p6, %p311_p3 }
  0x10   :  { %321 = shalt.err (!%p318_p7)
}
  0x11   :  { %s395_s28 = smov 64   ;;  %s396_s29 = smov 4  }
  0x12   :  { %34 = dma.hbm_to_vmem [thread:$0]  %s493_s1, 256, %s29_s19, [#allocation6], %s395_s28, %s395_s28, %s396_s29  }
  0x13   :  { %s397_s7 = smov [#allocation2]   ;;  %s398_s9 = smov [#allocation7]  }
  0x14   :  { %s19_s8 = sshll.u32 %s397_s7, 4  ;;  %s42_s10 = sshll.u32 %s398_s9, 4  ;;  %s20_s8 = int_to_ptr.vmem [resolvable:$true] %s19_s8  ;;  %s43_s10 = int_to_ptr.vmem [resolvable:$true] %s42_s10 }
  0x15   :  { %s322_s13 = scalar_lea.hbm %s492_s0, 32 }
  0x16   :  { %p323_p8 = scmp.ne.s32.totalorder %s492_s0, %s322_s13  ;;  %p326_p9 = scmp.lt.u32.totalorder %s322_s13, %s492_s0 }
  0x18   :  { %p328_p10 = pnand %p326_p9, %p323_p8 }
  0x1a   :  { %331 = shalt.err (!%p328_p10)
}
  0x1b   :  { %s332_s1 = scalar_lea.vmem %s20_s8, 32  ;;  %p337_p12 = scmp.lt.s32.totalorder %s20_s8, %s20_s8 }
  0x1c   :  { %p333_p11 = scmp.ne.s32.totalorder %s20_s8, %s332_s1  ;;  %p338_p13 = scmp.lt.s32.totalorder %s332_s1, %s332_s1 }
  0x1e   :  { %p339_p0 = por %p338_p13, %p337_p12 }
  0x20   :  { %p340_p1 = pnand %p339_p0, %p333_p11 }
  0x22   :  { %343 = shalt.err (!%p340_p1)
}
  0x23   :  { %22 = dma.hbm_to_vmem [thread:$0]  %s492_s0, 32, %s20_s8, [#allocation3]  }
  0x24   :  { %s344_s22 = scalar_lea.hbm %s495_s3, 512 }
  0x25   :  { %p345_p2 = scmp.ne.s32.totalorder %s495_s3, %s344_s22  ;;  %p348_p3 = scmp.lt.u32.totalorder %s344_s22, %s495_s3 }
  0x27   :  { %p350_p4 = pnand %p348_p3, %p345_p2 }
  0x29   :  { %353 = shalt.err (!%p350_p4)
}
  0x2a   :  { %s354_s27 = scalar_lea.vmem %s43_s10, 512  ;;  %p359_p6 = scmp.lt.s32.totalorder %s43_s10, %s43_s10 }
  0x2b   :  { %p355_p5 = scmp.ne.s32.totalorder %s43_s10, %s354_s27  ;;  %p360_p7 = scmp.lt.s32.totalorder %s354_s27, %s354_s27 }
  0x2d   :  { %p361_p8 = por %p360_p7, %p359_p6 }
  0x2f   :  { %p362_p9 = pnand %p361_p8, %p355_p5 }
  0x31   :  { %365 = shalt.err (!%p362_p9)
}
  0x32   :  { %48 = dma.hbm_to_vmem [thread:$0]  %s495_s3, 512, %s43_s10, [#allocation6], %s395_s28, %s395_s28, %s396_s29  }
  0x33   :  { %388 = dma.done.wait [#allocation3], 32  }
  0x34   :  { %389 = vsyncadd [#allocation3], 4294967264 }
  0x35   :  { %390 = dma.done.wait [#allocation6], 768  }
  0x36   :  { %391 = vsyncadd [#allocation6], 4294966528  ;;  %v399_v0 = vmov 0.0   ;;  %vm400_vm0 = vmmov 0   ;;  %v290_v1 = vld [vmem:[#allocation5] sm:$0xff]   ;;  %v291_v2 = vld [vmem:[#allocation5 + $0x8] sm:$0xff]  }
  0x37   :  { %262 = vmatprep.subr.bf16.mxu0 %v399_v0  ;;  %266 = vmatprep.mubr.msk.bf16.mxu0 %vm400_vm0, %v399_v0  ;;  %v61_v3 = vld [vmem:[#allocation2] sm:$0x3]  ;;  %vm86_vm1 = vcmask 261120   ;;  %v292_v5 = vld [vmem:[#allocation7] sm:$0xff]   ;;  %v294_v7 = vld [vmem:[#allocation7 + $0x10] sm:$0xff]   ;;  %vm175_vm2 = vcmask 523264  }
  0x38   :  { %270 = vmatprep.subr.bf16.mxu1 %v399_v0  ;;  %278 = vmatprep.mubr.msk.bf16.mxu1 %vm400_vm0, %v399_v0  ;;  %v62_v4 = vpack.c.bf16 %v61_v3, %v61_v3  ;;  %v293_v6 = vld [vmem:[#allocation7 + $0x8] sm:$0xff]   ;;  %v295_v8 = vld [vmem:[#allocation7 + $0x18] sm:$0xff]   ;;  %vm220_vm3 = vcmask 1041408  }
  0x39   :  { %263 = vmatpush3.bf16.msra.mxu0 %v290_v1  ;;  %271 = vmatpush3.bf16.msra.mxu1 %v292_v5  ;;  %v244_v9 = vld [vmem:[%s494_s2] ss:$0 sm:$0xff]  ;;  %s401_s2 = smov [#allocation8]  }
  0x3a   :  { %264 = vmatprep.subr.bf16.mxu0 %v399_v0  ;;  %272 = vmatprep.subr.bf16.mxu1 %v399_v0  ;;  %v248_v21 = vld [vmem:[%s496_s4] ss:$0 sm:$0xff]  ;;  %s234_s7 = sshll.u32 %s401_s2, 4  ;;  %s235_s7 = int_to_ptr.vmem [resolvable:$true] %s234_s7 }
  0x3b   :  { %s366_s8 = scalar_lea.vmem %s235_s7, 32  ;;  %p371_p11 = scmp.lt.s32.totalorder %s235_s7, %s235_s7 }
  0x3c   :  { %p367_p10 = scmp.ne.s32.totalorder %s235_s7, %s366_s8  ;;  %p372_p12 = scmp.lt.s32.totalorder %s366_s8, %s366_s8 }
  0x3d   :  { %265 = vmatpush3.bf16.msra.mxu0 %v291_v2  ;;  %273 = vmatpush3.bf16.msra.mxu1 %v293_v6 }
  0x3e   :  { %274 = vmatprep.subr.bf16.mxu1 %v399_v0  ;;  %p373_p13 = por %p372_p12, %p371_p11 }
  0x40   :  { %267 = vmatmul.mubr.msk.bf16.vlgmr.msra.gmra.mrb[0].mxu0 %vm86_vm1, %v62_v4  ;;  %p374_p0 = pnand %p373_p13, %p367_p10 }
  0x41   :  { %275 = vmatpush3.bf16.msra.mxu1 %v294_v7 }
  0x42   :  { %276 = vmatprep.subr.bf16.mxu1 %v399_v0 }
  0x45   :  { %277 = vmatpush3.bf16.msra.mxu1 %v295_v8 }
 0x113   :  { %v124_v10 = vpop.f32.mrb[0].mxu0 }
 0x114   :  { %v125_v11 = vadd.f32 %v244_v9, %v124_v10  ;;  %v268_v12 = vpop.f32.mrb[1].mxu0 }
 0x115   :  { %v127_v13 = vpop.f32.mrb[2].mxu0 }
 0x116   :  { %v131_v14 = vmul.f32 0.70710677, %v125_v11  ;;  %v269_v15 = vpop.f32.mrb[3].mxu0  ;;  %v130_v17 = vmul.f32 0.5, %v125_v11 }
 0x118   :  { %296 = verf.f32 %v131_v14 }
 0x122   :  { %v297_v16 = vpop.eup %296 }
 0x123   :  { %v133_v18 = vadd.f32 1.0, %v297_v16 }
 0x125   :  { %v134_v19 = vmul.f32 %v133_v18, %v130_v17 }
 0x127   :  { %v135_v20 = vpack.c.bf16 %v134_v19, %v134_v19 }
 0x129   :  { %279 = vmatmul.mubr.msk.bf16.vlgmr.msra.gmra.mrb[0].mxu1 %vm175_vm2, %v135_v20 }
 0x1fc   :  { %v213_v22 = vpop.f32.mrb[0].mxu1 }
 0x1fd   :  { %v214_v23 = vadd.f32 %v248_v21, %v213_v22  ;;  %v280_v24 = vpop.f32.mrb[1].mxu1 }
 0x1fe   :  { %v216_v25 = vpop.f32.mrb[2].mxu1 }
 0x1ff   :  { %v281_v26 = vpop.f32.mrb[3].mxu1  ;;  %v219_v27 = vmul.f32 %v214_v23, %v214_v23 }
 0x201   :  { %v221_v28 = vsel %vm220_vm3, %v219_v27, 0.0 }
 0x202   :  { %222 = vadd.xlane.f32.xlu0 %v221_v28 }
 0x28f   :  { %v223_v29 = vpop.xlane.xlu0 %222 }
 0x290   :  { %v224_v30 = vmax.f32 %v223_v29, 1e-24 }
 0x292   :  { %298 = vrsqrt.f32 %v224_v30 }
 0x29c   :  { %v299_v31 = vpop.eup %298 }
 0x29d   :  { %v226_v32 = vmul.f32 %v299_v31, %v214_v23 }
 0x29f   :  { %227 = vst [vmem:[#allocation8] sm:$0x3] %v226_v32 }
 0x2a0   :  { %377 = shalt.err (!%p374_p0)
}
 0x2a1   :  { %s378_s10 = scalar_lea.hbm %s497_s5, 32 }
 0x2a2   :  { %p379_p1 = scmp.ne.s32.totalorder %s497_s5, %s378_s10  ;;  %p382_p2 = scmp.lt.u32.totalorder %s378_s10, %s497_s5 }
 0x2a4   :  { %p384_p3 = pnand %p382_p2, %p379_p1 }
 0x2a6   :  { %387 = shalt.err (!%p384_p3)
}
 0x2a7   :  { %237 = dma.vmem_to_hbm [thread:$0]  %s235_s7, 32, %s497_s5, [#allocation4]  }
 0x2a8   :  { %392 = dma.done.wait [#allocation4], 32  }
 0x2a9   :  { %393 = vsyncadd [#allocation4], 4294967264 }
 0x2aa   :  { %241 = vsyncpa [#allocation3], 1 }
 0x2ab   :  { %242 = vsyncpa [#allocation6], 1 }
 0x2ac   :  { %243 = vsyncpa [#allocation4], 1 }

// kernel: tpu_custom_call.1
= control target key start
LH: loop header
LB: loop body
LE: loop exit
PB: predicated region body
PF: predicated region fallthrough
CT: control target
= control target key end

     0   :  { %10 = vsyncpa [#allocation3], 0  ;;  %s492_s0 = inlined_call_operand.hbm [shape: f32[2,32], index: 0, kind: input, shape index: {}]   ;;  %s493_s1 = inlined_call_operand.hbm [shape: bf16[32,64], index: 1, kind: input, shape index: {}]   ;;  %s494_s2 = inlined_call_operand.vmem [shape: f32[1,64], index: 2, kind: input, shape index: {}]   ;;  %s495_s3 = inlined_call_operand.hbm [shape: bf16[64,128], index: 3, kind: input, shape index: {}]   ;;  %s496_s4 = inlined_call_operand.vmem [shape: f32[1,128], index: 4, kind: input, shape index: {}]   ;;  %s497_s5 = inlined_call_operand.hbm [shape: f32[2,128], index: 5, kind: output, shape index: {}]  }
   0x1   :  { %11 = vsyncpa [#allocation6], 0 }
   0x2   :  { %12 = vsyncpa [#allocation4], 0  ;;  %s394_s18 = smov [#allocation5]   ;;  %s300_s22 = scalar_lea.hbm %s493_s1, 256 }
   0x3   :  { %s28_s19 = sshll.u32 %s394_s18, 4  ;;  %p301_p0 = scmp.ne.s32.totalorder %s493_s1, %s300_s22  ;;  %s29_s19 = int_to_ptr.vmem [resolvable:$true] %s28_s19 }
   0x4   :  { %p304_p1 = scmp.lt.u32.totalorder %s300_s22, %s493_s1 }
   0x6   :  { %p306_p2 = pnand %p304_p1, %p301_p0 }
   0x8   :  { %309 = shalt.err (!%p306_p2)
}
   0x9   :  { %s310_s27 = scalar_lea.vmem %s29_s19, 256  ;;  %p315_p4 = scmp.lt.s32.totalorder %s29_s19, %s29_s19 }
   0xa   :  { %p311_p3 = scmp.ne.s32.totalorder %s29_s19, %s310_s27  ;;  %p316_p5 = scmp.lt.s32.totalorder %s310_s27, %s310_s27 }
   0xc   :  { %p317_p6 = por %p316_p5, %p315_p4 }
   0xe   :  { %p318_p7 = pnand %p317_p6, %p311_p3 }
  0x10   :  { %321 = shalt.err (!%p318_p7)
}
  0x11   :  { %s395_s28 = smov 64   ;;  %s396_s29 = smov 4  }
  0x12   :  { %34 = dma.hbm_to_vmem [thread:$0]  %s493_s1, 256, %s29_s19, [#allocation6], %s395_s28, %s395_s28, %s396_s29  }
  0x13   :  { %s397_s7 = smov [#allocation2]   ;;  %s398_s9 = smov [#allocation7]  }
  0x14   :  { %s19_s8 = sshll.u32 %s397_s7, 4  ;;  %s42_s10 = sshll.u32 %s398_s9, 4  ;;  %s20_s8 = int_to_ptr.vmem [resolvable:$true] %s19_s8  ;;  %s43_s10 = int_to_ptr.vmem [resolvable:$true] %s42_s10 }
  0x15   :  { %s322_s13 = scalar_lea.hbm %s492_s0, 32 }
  0x16   :  { %p323_p8 = scmp.ne.s32.totalorder %s492_s0, %s322_s13  ;;  %p326_p9 = scmp.lt.u32.totalorder %s322_s13, %s492_s0 }
  0x18   :  { %p328_p10 = pnand %p326_p9, %p323_p8 }
  0x1a   :  { %331 = shalt.err (!%p328_p10)
}
  0x1b   :  { %s332_s1 = scalar_lea.vmem %s20_s8, 32  ;;  %p337_p12 = scmp.lt.s32.totalorder %s20_s8, %s20_s8 }
  0x1c   :  { %p333_p11 = scmp.ne.s32.totalorder %s20_s8, %s332_s1  ;;  %p338_p13 = scmp.lt.s32.totalorder %s332_s1, %s332_s1 }
  0x1e   :  { %p339_p0 = por %p338_p13, %p337_p12 }
  0x20   :  { %p340_p1 = pnand %p339_p0, %p333_p11 }
  0x22   :  { %343 = shalt.err (!%p340_p1)
}
  0x23   :  { %22 = dma.hbm_to_vmem [thread:$0]  %s492_s0, 32, %s20_s8, [#allocation3]  }
  0x24   :  { %s344_s22 = scalar_lea.hbm %s495_s3, 512 }
  0x25   :  { %p345_p2 = scmp.ne.s32.totalorder %s495_s3, %s344_s22  ;;  %p348_p3 = scmp.lt.u32.totalorder %s344_s22, %s495_s3 }
  0x27   :  { %p350_p4 = pnand %p348_p3, %p345_p2 }
  0x29   :  { %353 = shalt.err (!%p350_p4)
}
  0x2a   :  { %s354_s27 = scalar_lea.vmem %s43_s10, 512  ;;  %p359_p6 = scmp.lt.s32.totalorder %s43_s10, %s43_s10 }
  0x2b   :  { %p355_p5 = scmp.ne.s32.totalorder %s43_s10, %s354_s27  ;;  %p360_p7 = scmp.lt.s32.totalorder %s354_s27, %s354_s27 }
  0x2d   :  { %p361_p8 = por %p360_p7, %p359_p6 }
  0x2f   :  { %p362_p9 = pnand %p361_p8, %p355_p5 }
  0x31   :  { %365 = shalt.err (!%p362_p9)
}
  0x32   :  { %48 = dma.hbm_to_vmem [thread:$0]  %s495_s3, 512, %s43_s10, [#allocation6], %s395_s28, %s395_s28, %s396_s29  }
  0x33   :  { %388 = dma.done.wait [#allocation3], 32  }
  0x34   :  { %389 = vsyncadd [#allocation3], 4294967264 }
  0x35   :  { %390 = dma.done.wait [#allocation6], 768  }
  0x36   :  { %391 = vsyncadd [#allocation6], 4294966528  ;;  %v399_v0 = vmov 0.0   ;;  %vm400_vm0 = vmmov 0   ;;  %v290_v1 = vld [vmem:[#allocation5] sm:$0xff]   ;;  %v291_v2 = vld [vmem:[#allocation5 + $0x8] sm:$0xff]  }
  0x37   :  { %262 = vmatprep.subr.bf16.mxu0 %v399_v0  ;;  %266 = vmatprep.mubr.msk.bf16.mxu0 %vm400_vm0, %v399_v0  ;;  %v61_v3 = vld [vmem:[#allocation2] sm:$0x3]  ;;  %vm86_vm1 = vcmask 261120   ;;  %v292_v5 = vld [vmem:[#allocation7] sm:$0xff]   ;;  %v294_v7 = vld [vmem:[#allocation7 + $0x10] sm:$0xff]   ;;  %vm175_vm2 = vcmask 523264  }
  0x38   :  { %270 = vmatprep.subr.bf16.mxu1 %v399_v0  ;;  %278 = vmatprep.mubr.msk.bf16.mxu1 %vm400_vm0, %v399_v0  ;;  %v62_v4 = vpack.c.bf16 %v61_v3, %v61_v3  ;;  %v293_v6 = vld [vmem:[#allocation7 + $0x8] sm:$0xff]   ;;  %v295_v8 = vld [vmem:[#allocation7 + $0x18] sm:$0xff]   ;;  %vm220_vm3 = vcmask 1041408  }
  0x39   :  { %263 = vmatpush3.bf16.msra.mxu0 %v290_v1  ;;  %271 = vmatpush3.bf16.msra.mxu1 %v292_v5  ;;  %v244_v9 = vld [vmem:[%s494_s2] ss:$0 sm:$0xff]  ;;  %s401_s2 = smov [#allocation8]  }
  0x3a   :  { %264 = vmatprep.subr.bf16.mxu0 %v399_v0  ;;  %272 = vmatprep.subr.bf16.mxu1 %v399_v0  ;;  %v248_v21 = vld [vmem:[%s496_s4] ss:$0 sm:$0xff]  ;;  %s234_s7 = sshll.u32 %s401_s2, 4  ;;  %s235_s7 = int_to_ptr.vmem [resolvable:$true] %s234_s7 }
  0x3b   :  { %s366_s8 = scalar_lea.vmem %s235_s7, 32  ;;  %p371_p11 = scmp.lt.s32.totalorder %s235_s7, %s235_s7 }
  0x3c   :  { %p367_p10 = scmp.ne.s32.totalorder %s235_s7, %s366_s8  ;;  %p372_p12 = scmp.lt.s32.totalorder %s366_s8, %s366_s8 }
  0x3d   :  { %265 = vmatpush3.bf16.msra.mxu0 %v291_v2  ;;  %273 = vmatpush3.bf16.msra.mxu1 %v293_v6 }
  0x3e   :  { %274 = vmatprep.subr.bf16.mxu1 %v399_v0  ;;  %p373_p13 = por %p372_p12, %p371_p11 }
  0x40   :  { %267 = vmatmul.mubr.msk.bf16.vlgmr.msra.gmra.mrb[0].mxu0 %vm86_vm1, %v62_v4  ;;  %p374_p0 = pnand %p373_p13, %p367_p10 }
  0x41   :  { %275 = vmatpush3.bf16.msra.mxu1 %v294_v7 }
  0x42   :  { %276 = vmatprep.subr.bf16.mxu1 %v399_v0 }
  0x45   :  { %277 = vmatpush3.bf16.msra.mxu1 %v295_v8 }
 0x113   :  { %v124_v10 = vpop.f32.mrb[0].mxu0 }
 0x114   :  { %v125_v11 = vadd.f32 %v244_v9, %v124_v10  ;;  %v268_v12 = vpop.f32.mrb[1].mxu0 }
 0x115   :  { %v127_v13 = vpop.f32.mrb[2].mxu0 }
 0x116   :  { %v131_v14 = vmul.f32 0.70710677, %v125_v11  ;;  %v269_v15 = vpop.f32.mrb[3].mxu0  ;;  %v130_v17 = vmul.f32 0.5, %v125_v11 }
 0x118   :  { %296 = verf.f32 %v131_v14 }
 0x122   :  { %v297_v16 = vpop.eup %296 }
 0x123   :  { %v133_v18 = vadd.f32 1.0, %v297_v16 }
 0x125   :  { %v134_v19 = vmul.f32 %v133_v18, %v130_v17 }
 0x127   :  { %v135_v20 = vpack.c.bf16 %v134_v19, %v134_v19 }
 0x129   :  { %279 = vmatmul.mubr.msk.bf16.vlgmr.msra.gmra.mrb[0].mxu1 %vm175_vm2, %v135_v20 }
 0x1fc   :  { %v213_v22 = vpop.f32.mrb[0].mxu1 }
 0x1fd   :  { %v214_v23 = vadd.f32 %v248_v21, %v213_v22  ;;  %v280_v24 = vpop.f32.mrb[1].mxu1 }
 0x1fe   :  { %v216_v25 = vpop.f32.mrb[2].mxu1 }
 0x1ff   :  { %v281_v26 = vpop.f32.mrb[3].mxu1  ;;  %v219_v27 = vmul.f32 %v214_v23, %v214_v23 }
 0x201   :  { %v221_v28 = vsel %vm220_vm3, %v219_v27, 0.0 }
 0x202   :  { %222 = vadd.xlane.f32.xlu0 %v221_v28 }
 0x28f   :  { %v223_v29 = vpop.xlane.xlu0 %222 }
 0x290   :  { %v224_v30 = vmax.f32 %v223_v29, 1e-24 }
 0x292   :  { %298 = vrsqrt.f32 %v224_v30 }
 0x29c   :  { %v299_v31 = vpop.eup %298 }
 0x29d   :  { %v226_v32 = vmul.f32 %v299_v31, %v214_v23 }
 0x29f   :  { %227 = vst [vmem:[#allocation8] sm:$0x3] %v226_v32 }
 0x2a0   :  { %377 = shalt.err (!%p374_p0)
}
 0x2a1   :  { %s378_s10 = scalar_lea.hbm %s497_s5, 32 }
 0x2a2   :  { %p379_p1 = scmp.ne.s32.totalorder %s497_s5, %s378_s10  ;;  %p382_p2 = scmp.lt.u32.totalorder %s378_s10, %s497_s5 }
 0x2a4   :  { %p384_p3 = pnand %p382_p2, %p379_p1 }
 0x2a6   :  { %387 = shalt.err (!%p384_p3)
}
 0x2a7   :  { %237 = dma.vmem_to_hbm [thread:$0]  %s235_s7, 32, %s497_s5, [#allocation4]  }
 0x2a8   :  { %392 = dma.done.wait [#allocation4], 32  }
 0x2a9   :  { %393 = vsyncadd [#allocation4], 4294967264 }
 0x2aa   :  { %241 = vsyncpa [#allocation3], 1 }
 0x2ab   :  { %242 = vsyncpa [#allocation6], 1 }
 0x2ac   :  { %243 = vsyncpa [#allocation4], 1 }

</bundles_post_ra>
